<compile_context>
chip_gen: v7x
topology: tpu7x:2x2x1
jax: 0.10.0
libtpu: 0.0.40
codegen_flags: <defaults>
</compile_context>

<pallas_src>
import functools

import jax
import jax.numpy as jnp
from jax.experimental import pallas as pl
from jax.experimental.pallas import tpu as pltpu


def _pick_k_chunk(K):
    """Codebook sublane chunk: <=256 rows, multiple of 8, dividing K."""
    if K <= 256:
        return K
    for cand in (256, 128, 64, 32, 16, 8):
        if K % cand == 0:
            return cand
    return K  # fallback: single chunk


def _vq_kernel(e_ref, et_ref, hesq_ref, z_ref, zq_ref, idx_ref, stats_ref,
               *, k_chunk, mm_dtype):
    """Quantize one (D, TN) column tile of z against the full (K, D) codebook.

    Layout is feature-major: D (emb_dim) on sublanes, flattened pixels on
    lanes.  The codebook is processed in sublane chunks with a running
    (min_val, min_idx, dsum) reduction; a second chunked pass does the
    one-hot gather matmul on the MXU.
    """
    z_t = z_ref[...].astype(jnp.float32)                      # (D, TN)
    D, TN = z_t.shape
    K = e_ref.shape[0]
    nc = K // k_chunk

    z_mm = z_t.astype(mm_dtype) if mm_dtype is not None else z_t

    min_val = jnp.full((1, TN), jnp.inf, dtype=jnp.float32)
    min_idx = jnp.zeros((1, TN), dtype=jnp.int32)
    dsum = jnp.zeros((1, TN), dtype=jnp.float32)

    # Pass 1: running argmin / partial distance sums over codebook chunks.
    for c in range(nc):
        e_c = e_ref[pl.ds(c * k_chunk, k_chunk), :].astype(jnp.float32)
        hesq_c = hesq_ref[pl.ds(c * k_chunk, k_chunk), :]     # (kc, 1) = 0.5*||e||^2
        e_mm = e_c.astype(mm_dtype) if mm_dtype is not None else e_c
        ze = jnp.dot(e_mm, z_mm, preferred_element_type=jnp.float32)   # (kc, TN)
        d = hesq_c - ze                                        # (kc, TN) == (dist - ||z||^2)/2
        dsum = dsum + jnp.sum(d, axis=0, keepdims=True)
        local_min = jnp.min(d, axis=0, keepdims=True)          # (1, TN)
        iota = jax.lax.broadcasted_iota(jnp.int32, d.shape, 0)
        local_idx = jnp.min(jnp.where(d == local_min, iota, k_chunk),
                            axis=0, keepdims=True) + c * k_chunk
        better = local_min < min_val                           # strict: earlier chunk wins ties
        min_idx = jnp.where(better, local_idx, min_idx)
        min_val = jnp.where(better, local_min, min_val)

    # Pass 2: chunked one-hot codebook gather on the MXU: z_q^T = e^T @ onehot.
    zq = jnp.zeros((D, TN), dtype=jnp.float32)
    for c in range(nc):
        iota = jax.lax.broadcasted_iota(jnp.int32, (k_chunk, TN), 0) + c * k_chunk
        onehot = (iota == min_idx).astype(jnp.float32)
        et_c = et_ref[:, pl.ds(c * k_chunk, k_chunk)].astype(jnp.float32)
        zq = zq + jnp.dot(et_c, onehot, preferred_element_type=jnp.float32)

    zq_ref[...] = zq.astype(zq_ref.dtype)
    idx_ref[...] = min_idx

    # Per-column partial sums; reduced (and de-padded) in the wrapper.
    z_sq = jnp.sum(z_t * z_t, axis=0, keepdims=True)           # (1, TN)
    diff = zq - z_t
    err = jnp.sum(diff * diff, axis=0, keepdims=True)          # (1, TN)
    d_full_sum = 2.0 * dsum + K * z_sq                         # sum_k of full distance
    stats_ref[...] = jnp.concatenate([d_full_sum, err], axis=0)


def vector_quantizer_forward(z_nchw, embedding, beta, *, tile_hw=512,
                             bf16_distances=False):
    """Pallas implementation of VectorQuantizer.forward (inference values).

    z_nchw:    (B, C, H, W) with C == emb_dim
    embedding: (codebook_size, emb_dim)
    Returns (z_q_nchw, loss, stats-dict) mirroring the PyTorch module.
    """
    B, C, H, W = z_nchw.shape
    K, D = embedding.shape
    assert C == D, "channel dim must equal emb_dim"
    assert D % 8 == 0, "emb_dim must be a multiple of 8 (sublane tiling)"
    HW = H * W
    N = B * HW

    # Lane tile: multiple of 128, no larger than the 128-padded H*W.
    hw_pad0 = pl.cdiv(HW, 128) * 128
    tile_hw = max(128, min((int(tile_hw) // 128) * 128, hw_pad0))
    # v7x megacore: prefer >= 2 total grid steps when the batch is 1.
    if B == 1 and tile_hw >= hw_pad0 and hw_pad0 >= 256:
        tile_hw = max(128, ((hw_pad0 // 2) // 128) * 128)
    num_hw_tiles = pl.cdiv(hw_pad0, tile_hw)
    hw_pad = num_hw_tiles * tile_hw

    # Contiguous feature-major view: (B, D, H, W) -> (B*D, HW).  No transpose,
    # no data movement when HW is already a tile multiple (typical VQGAN
    # latents: 16x16, 32x32).  Pad columns are sliced off in the wrapper.
    if hw_pad == HW:
        z_rows = z_nchw.reshape(B * D, HW)
    else:
        z_rows = jnp.pad(z_nchw.reshape(B, D, HW),
                         ((0, 0), (0, 0), (0, hw_pad - HW))).reshape(B * D, hw_pad)

    e_t = jnp.transpose(embedding)                                          # (D, K)
    half_e_sq = 0.5 * jnp.sum(embedding.astype(jnp.float32) ** 2, axis=1,
                              keepdims=True)                                # (K, 1)

    k_chunk = _pick_k_chunk(K)
    mm_dtype = jnp.bfloat16 if bf16_distances else None

    out_shapes = (
        jax.ShapeDtypeStruct((B * D, hw_pad), z_nchw.dtype),    # z_q (feature-major)
        jax.ShapeDtypeStruct((1, B * hw_pad), jnp.int32),       # indices
        jax.ShapeDtypeStruct((2, B * hw_pad), jnp.float32),     # row0: sum_k d, row1: sum_d (zq-z)^2
    )

    grid_spec = pltpu.PrefetchScalarGridSpec(
        num_scalar_prefetch=0,
        grid=(B, num_hw_tiles),
        in_specs=[
            pl.BlockSpec((K, D), lambda b, i: (0, 0)),           # codebook (resident)
            pl.BlockSpec((D, K), lambda b, i: (0, 0)),           # codebook^T (resident)
            pl.BlockSpec((K, 1), lambda b, i: (0, 0)),           # 0.5*||e||^2 (resident)
            pl.BlockSpec((D, tile_hw), lambda b, i: (b, i)),     # z column tile
        ],
        out_specs=[
            pl.BlockSpec((D, tile_hw), lambda b, i: (b, i)),
            pl.BlockSpec((1, tile_hw), lambda b, i: (0, b * num_hw_tiles + i)),
            pl.BlockSpec((2, tile_hw), lambda b, i: (0, b * num_hw_tiles + i)),
        ],
    )

    cost = pl.CostEstimate(
        flops=4 * B * hw_pad * K * D,                       # two K*D-contraction matmuls
        transcendentals=0,
        bytes_accessed=4 * (2 * B * hw_pad * D + 3 * B * hw_pad + 2 * K * D + K),
    )

    zq_rows, idx_pad, stats_pad = pl.pallas_call(
        functools.partial(_vq_kernel, k_chunk=k_chunk, mm_dtype=mm_dtype),
        out_shape=out_shapes,
        grid_spec=grid_spec,
        compiler_params=pltpu.CompilerParams(
            dimension_semantics=("parallel", "parallel"),   # no revisited blocks
            vmem_limit_bytes=32 * 1024 * 1024),
        cost_estimate=cost,
    )(embedding, e_t, half_e_sq, z_rows)

    # De-pad and reduce the per-column partial sums in the wrapper (f32).
    idx_b = idx_pad.reshape(B, hw_pad)[:, :HW]                  # (B, HW), (b,h,w) order
    idx_flat = idx_b.reshape(-1)
    stats_b = stats_pad.reshape(2, B, hw_pad)[:, :, :HW]
    d_sum = jnp.sum(stats_b[0])
    err_sum = jnp.sum(stats_b[1])

    mean_distance = d_sum / (N * K)
    mse = err_sum / (N * D)
    # Forward value: mean((zq.detach()-z)^2) + beta*mean((zq-z.detach())^2)
    # == (1+beta)*mse  (detach only affects gradients, not forward values).
    loss = (1.0 + beta) * mse

    # min_encodings is part of the module's return contract; rebuild the dense
    # one-hot in plain JAX (kept out of the kernel's HBM traffic).
    min_encodings = jax.nn.one_hot(idx_flat, K, dtype=jnp.float32)
    e_mean = jnp.mean(min_encodings, axis=0)
    perplexity = jnp.exp(-jnp.sum(e_mean * jnp.log(e_mean + 1e-10)))

    # Straight-through: z + (z_q - z).detach() == z_q in forward values.
    zq_nchw = zq_rows.reshape(B, D, hw_pad)[:, :, :HW].reshape(B, D, H, W)

    stats = {
        "perplexity": perplexity,
        "min_encodings": min_encodings,
        "min_encoding_indices": idx_flat[:, None].astype(jnp.int32),
        "mean_distance": mean_distance,
    }
    return zq_nchw, loss, stats


def _reference(z_nchw, embedding, beta):
    """Pure-JAX mirror of the PyTorch forward (for sanity checking)."""
    B, C, H, W = z_nchw.shape
    K, D = embedding.shape
    z = jnp.transpose(z_nchw, (0, 2, 3, 1)).reshape(-1, D)
    d = (jnp.sum(z ** 2, 1, keepdims=True) + jnp.sum(embedding ** 2, 1)
         - 2.0 * z @ embedding.T)
    idx = jnp.argmin(d, axis=1)
    onehot = jax.nn.one_hot(idx, K, dtype=jnp.float32)
    zq = onehot @ embedding
    loss = (1.0 + beta) * jnp.mean((zq - z) ** 2)
    zq = jnp.transpose(zq.reshape(B, H, W, D), (0, 3, 1, 2))
    return zq, loss, idx, jnp.mean(d), d


if __name__ == "__main__":
    # Small, deterministic setup consistent with the module's __init__.
    codebook_size = 128
    emb_dim = 32
    beta = 0.25
    B, H, W = 2, 16, 16       # H*W = 256 -> pure-view (no pad) fast path

    key = jax.random.PRNGKey(0)
    k_emb, k_z = jax.random.split(key)

    # nn.Embedding weight ~ U(-1/K, 1/K)  (deterministic synthetic init)
    embedding = jax.random.uniform(
        k_emb, (codebook_size, emb_dim), dtype=jnp.float32,
        minval=-1.0 / codebook_size, maxval=1.0 / codebook_size)

    z = jax.random.normal(k_z, (B, emb_dim, H, W), dtype=jnp.float32)

    zq, loss, stats = jax.jit(
        functools.partial(vector_quantizer_forward, beta=beta)
    )(z, embedding)
    jax.block_until_ready((zq, loss, stats))

    # --- sanity checks against the pure-JAX reference -----------------------
    zq_ref, loss_ref, idx_ref, mean_d_ref, d_ref = _reference(z, embedding, beta)
    idx_k = stats["min_encoding_indices"][:, 0]
    n_ar = jnp.arange(idx_k.shape[0])

    # Kernel-chosen code must be an argmin up to float rounding (near-ties in
    # the f32 reference can legitimately flip); the vast majority must match.
    assert bool(jnp.all(d_ref[n_ar, idx_k] <= d_ref[n_ar, idx_ref] + 1e-4)), \
        "argmin mismatch"
    assert float(jnp.mean((idx_k == idx_ref).astype(jnp.float32))) > 0.99, \
        "too many index mismatches"
    # z_q must be exactly the gathered codebook entries for the chosen indices.
    zq_gather = jnp.transpose(
        jnp.take(embedding, idx_k, axis=0).reshape(B, H, W, emb_dim), (0, 3, 1, 2))
    assert bool(jnp.allclose(zq, zq_gather, atol=1e-6)), "z_q gather mismatch"
    assert bool(jnp.allclose(loss, loss_ref, rtol=1e-4, atol=1e-6)), "loss mismatch"
    assert bool(jnp.allclose(stats["mean_distance"], mean_d_ref,
                             rtol=1e-4, atol=1e-4)), "mean_distance mismatch"

    print("KERNEL_OK")
</pallas_src>

<mosaic_0001>
module attributes {stable_mosaic.version = 11 : i64} {
  func.func @_vq_kernel(%arg0: i32, %arg1: i32, %arg2: memref<128x32xf32, #tpu.memory_space<vmem>>, %arg3: memref<32x128xf32, #tpu.memory_space<vmem>>, %arg4: memref<128x1xf32, #tpu.memory_space<vmem>>, %arg5: memref<32x256xf32, #tpu.memory_space<vmem>>, %arg6: memref<32x256xf32, #tpu.memory_space<vmem>>, %arg7: memref<1x256xi32, #tpu.memory_space<vmem>>, %arg8: memref<2x256xf32, #tpu.memory_space<vmem>>) attributes {dimension_semantics = [#tpu.dimension_semantics<parallel>, #tpu.dimension_semantics<parallel>], iteration_bounds = array<i64: 2, 1>, scalar_prefetch = 0 : i64, scratch_operands = 0 : i64, tpu.core_type = #tpu.core_type<tc>, window_params = [{pipeline_mode = #tpu.pipeline_mode<synchronous>, transform_indices = @transform_0, window_bounds = array<i64: 128, 32>}, {pipeline_mode = #tpu.pipeline_mode<synchronous>, transform_indices = @transform_1, window_bounds = array<i64: 32, 128>}, {pipeline_mode = #tpu.pipeline_mode<synchronous>, transform_indices = @transform_2, window_bounds = array<i64: 128, 1>}, {transform_indices = @transform_3, window_bounds = array<i64: 32, 256>}, {transform_indices = @transform_4, window_bounds = array<i64: 32, 256>}, {transform_indices = @transform_5, window_bounds = array<i64: 1, 256>}, {transform_indices = @transform_6, window_bounds = array<i64: 2, 256>}]} {
    %c0 = arith.constant 0 : index
    %c0_0 = arith.constant 0 : index
    %0 = vector.load %arg5[%c0, %c0_0] : memref<32x256xf32, #tpu.memory_space<vmem>>, vector<32x256xf32>
    %cst = arith.constant 0x7F800000 : f32
    %1 = vector.broadcast %cst : f32 to vector<1x256xf32>
    %c0_i32 = arith.constant 0 : i32
    %2 = vector.broadcast %c0_i32 : i32 to vector<1x256xi32>
    %cst_1 = arith.constant 0.000000e+00 : f32
    %3 = vector.broadcast %cst_1 : f32 to vector<1x256xf32>
    %c0_2 = arith.constant 0 : index
    %c0_3 = arith.constant 0 : index
    %4 = vector.load %arg2[%c0_2, %c0_3] : memref<128x32xf32, #tpu.memory_space<vmem>>, vector<128x32xf32>
    %c0_4 = arith.constant 0 : index
    %c0_5 = arith.constant 0 : index
    %5 = vector.load %arg4[%c0_4, %c0_5] : memref<128x1xf32, #tpu.memory_space<vmem>>, vector<128x1xf32>
    %cst_6 = arith.constant dense<0.000000e+00> : vector<128x256xf32>
    %6 = tpu.matmul %4, %0, %cst_6 {dimension_numbers = #tpu.dot_dimension_numbers<[1], [0], [0], [1], [0, 0, 1, 1], [], []>} : vector<128x32xf32>, vector<32x256xf32>, vector<128x256xf32> -> vector<128x256xf32>
    %7 = vector.broadcast %5 : vector<128x1xf32> to vector<128x256xf32>
    %8 = arith.subf %7, %6 : vector<128x256xf32>
    %cst_7 = arith.constant dense<0.000000e+00> : vector<256xf32>
    %9 = vector.multi_reduction <add>, %8, %cst_7 [0] : vector<128x256xf32> to vector<256xf32>
    %10 = vector.shape_cast %9 : vector<256xf32> to vector<1x256xf32>
    %11 = arith.addf %3, %10 : vector<1x256xf32>
    %cst_8 = arith.constant dense<0x7F800000> : vector<256xf32>
    %12 = vector.multi_reduction <minimumf>, %8, %cst_8 [0] : vector<128x256xf32> to vector<256xf32>
    %13 = vector.shape_cast %12 : vector<256xf32> to vector<1x256xf32>
    %14 = tpu.iota {dimensions = array<i32: 0>} : vector<128x256xi32>
    %15 = vector.broadcast %13 : vector<1x256xf32> to vector<128x256xf32>
    %16 = arith.cmpf oeq, %8, %15 : vector<128x256xf32>
    %c128_i32 = arith.constant 128 : i32
    %17 = vector.broadcast %c128_i32 : i32 to vector<128x256xi32>
    %18 = arith.select %16, %14, %17 : vector<128x256xi1>, vector<128x256xi32>
    %cst_9 = arith.constant dense<2147483647> : vector<256xi32>
    %19 = vector.multi_reduction <minsi>, %18, %cst_9 [0] : vector<128x256xi32> to vector<256xi32>
    %20 = vector.shape_cast %19 : vector<256xi32> to vector<1x256xi32>
    %c0_i32_10 = arith.constant 0 : i32
    %21 = vector.broadcast %c0_i32_10 : i32 to vector<1x256xi32>
    %22 = arith.addi %20, %21 : vector<1x256xi32>
    %23 = arith.cmpf olt, %13, %1 : vector<1x256xf32>
    %24 = arith.select %23, %22, %2 : vector<1x256xi1>, vector<1x256xi32>
    %cst_11 = arith.constant 0.000000e+00 : f32
    %25 = vector.broadcast %cst_11 : f32 to vector<32x256xf32>
    %26 = tpu.iota {dimensions = array<i32: 0>} : vector<128x256xi32>
    %c0_i32_12 = arith.constant 0 : i32
    %27 = vector.broadcast %c0_i32_12 : i32 to vector<128x256xi32>
    %28 = arith.addi %26, %27 : vector<128x256xi32>
    %29 = vector.broadcast %24 : vector<1x256xi32> to vector<128x256xi32>
    %30 = arith.cmpi eq, %28, %29 : vector<128x256xi32>
    %31 = arith.extui %30 : vector<128x256xi1> to vector<128x256xi32>
    %32 = arith.sitofp %31 : vector<128x256xi32> to vector<128x256xf32>
    %c0_13 = arith.constant 0 : index
    %c0_14 = arith.constant 0 : index
    %33 = vector.load %arg3[%c0_13, %c0_14] : memref<32x128xf32, #tpu.memory_space<vmem>>, vector<32x128xf32>
    %cst_15 = arith.constant dense<0.000000e+00> : vector<32x256xf32>
    %34 = tpu.matmul %33, %32, %cst_15 {dimension_numbers = #tpu.dot_dimension_numbers<[1], [0], [0], [1], [0, 0, 1, 1], [], []>} : vector<32x128xf32>, vector<128x256xf32>, vector<32x256xf32> -> vector<32x256xf32>
    %35 = arith.addf %25, %34 : vector<32x256xf32>
    %c0_16 = arith.constant 0 : index
    %c0_17 = arith.constant 0 : index
    %36 = vector.load %arg6[%c0_16, %c0_17] : memref<32x256xf32, #tpu.memory_space<vmem>>, vector<32x256xf32>
    tpu.vector_store %arg6[%c0_16, %c0_17], %35 {strides = array<i32>} : memref<32x256xf32, #tpu.memory_space<vmem>>, vector<32x256xf32>,
    %c0_18 = arith.constant 0 : index
    %c0_19 = arith.constant 0 : index
    %37 = vector.load %arg7[%c0_18, %c0_19] : memref<1x256xi32, #tpu.memory_space<vmem>>, vector<1x256xi32>
    tpu.vector_store %arg7[%c0_18, %c0_19], %24 {strides = array<i32>} : memref<1x256xi32, #tpu.memory_space<vmem>>, vector<1x256xi32>,
    %38 = arith.mulf %0, %0 : vector<32x256xf32>
    %cst_20 = arith.constant dense<0.000000e+00> : vector<256xf32>
    %39 = vector.multi_reduction <add>, %38, %cst_20 [0] : vector<32x256xf32> to vector<256xf32>
    %40 = vector.shape_cast %39 : vector<256xf32> to vector<1x256xf32>
    %41 = arith.subf %35, %0 : vector<32x256xf32>
    %42 = arith.mulf %41, %41 : vector<32x256xf32>
    %cst_21 = arith.constant dense<0.000000e+00> : vector<256xf32>
    %43 = vector.multi_reduction <add>, %42, %cst_21 [0] : vector<32x256xf32> to vector<256xf32>
    %44 = vector.shape_cast %43 : vector<256xf32> to vector<1x256xf32>
    %cst_22 = arith.constant 2.000000e+00 : f32
    %45 = vector.broadcast %cst_22 : f32 to vector<1x256xf32>
    %46 = arith.mulf %45, %11 : vector<1x256xf32>
    %cst_23 = arith.constant 1.280000e+02 : f32
    %47 = vector.broadcast %cst_23 : f32 to vector<1x256xf32>
    %48 = arith.mulf %47, %40 : vector<1x256xf32>
    %49 = arith.addf %46, %48 : vector<1x256xf32>
    %50 = tpu.concatenate %49, %44 in 0 : vector<1x256xf32>, vector<1x256xf32> -> vector<2x256xf32>
    %c0_24 = arith.constant 0 : index
    %c0_25 = arith.constant 0 : index
    %51 = vector.load %arg8[%c0_24, %c0_25] : memref<2x256xf32, #tpu.memory_space<vmem>>, vector<2x256xf32>
    tpu.vector_store %arg8[%c0_24, %c0_25], %50 {strides = array<i32>} : memref<2x256xf32, #tpu.memory_space<vmem>>, vector<2x256xf32>,
    return
  }
  func.func @transform_0(%arg0: i32, %arg1: i32) -> (i32, i32) {
    %c0_i32 = arith.constant 0 : i32
    %c0_i32_0 = arith.constant 0 : i32
    %c0_i32_1 = arith.constant 0 : i32
    return %c0_i32, %c0_i32_0 : i32, i32
  }
  func.func @transform_1(%arg0: i32, %arg1: i32) -> (i32, i32) {
    %c0_i32 = arith.constant 0 : i32
    %c0_i32_0 = arith.constant 0 : i32
    %c0_i32_1 = arith.constant 0 : i32
    return %c0_i32, %c0_i32_0 : i32, i32
  }
  func.func @transform_2(%arg0: i32, %arg1: i32) -> (i32, i32) {
    %c0_i32 = arith.constant 0 : i32
    %c0_i32_0 = arith.constant 0 : i32
    %c0_i32_1 = arith.constant 0 : i32
    return %c0_i32, %c0_i32_0 : i32, i32
  }
  func.func @transform_3(%arg0: i32, %arg1: i32) -> (i32, i32) {
    %c0_i32 = arith.constant 0 : i32
    return %arg0, %arg1 : i32, i32
  }
  func.func @transform_4(%arg0: i32, %arg1: i32) -> (i32, i32) {
    %c0_i32 = arith.constant 0 : i32
    return %arg0, %arg1 : i32, i32
  }
  func.func @transform_5(%arg0: i32, %arg1: i32) -> (i32, i32) {
    %c1_i32 = arith.constant 1 : i32
    %0 = arith.muli %arg0, %c1_i32 : i32
    %1 = arith.addi %0, %arg1 : i32
    %c0_i32 = arith.constant 0 : i32
    %c0_i32_0 = arith.constant 0 : i32
    return %c0_i32, %1 : i32, i32
  }
  func.func @transform_6(%arg0: i32, %arg1: i32) -> (i32, i32) {
    %c1_i32 = arith.constant 1 : i32
    %0 = arith.muli %arg0, %c1_i32 : i32
    %1 = arith.addi %0, %arg1 : i32
    %c0_i32 = arith.constant 0 : i32
    %c0_i32_0 = arith.constant 0 : i32
    return %c0_i32, %1 : i32, i32
  }
}

</mosaic_0001>

<bundles_post_ra>
// kernel: vector_quantizer_forward.1
= control target key start
LH: loop header
LB: loop body
LE: loop exit
PB: predicated region body
PF: predicated region fallthrough
CT: control target
= control target key end

     0   :  { %s1641_s21 = smov 0   ;;  %s1643_s22 = smov 0   ;;  %s2365_s0 = inlined_call_operand.vmem [shape: f32[128,32], index: 0, kind: input, shape index: {}]   ;;  %s2366_s1 = inlined_call_operand.vmem [shape: f32[32,128], index: 1, kind: input, shape index: {}]   ;;  %s2367_s2 = inlined_call_operand.vmem [shape: f32[128,1], index: 2, kind: input, shape index: {}]   ;;  %s2368_s3 = inlined_call_operand.vmem [shape: f32[64,256], index: 3, kind: input, shape index: {}]   ;;  %s2369_s4 = inlined_call_operand.vmem [shape: f32[64,256], index: 4, kind: output, shape index: {0}]   ;;  %s2370_s5 = inlined_call_operand.vmem [shape: s32[1,512], index: 5, kind: output, shape index: {1}]   ;;  %s2371_s6 = inlined_call_operand.vmem [shape: f32[2,512], index: 6, kind: output, shape index: {2}]  }
   0x1   :  { %s1645_s23 = smov 0  }
   0x2 LB: > { %s29_s24 = sadd.s32 1, %s1596_s22  ;;  %p1405_p0 = scmp.ge.s32.totalorder %s1600_s23, 1  ;;  %s1600_s23 = sphi %s1645_s23, %s17_s23   ;;  %s1596_s22 = sphi %s1643_s22, %s2390_s22   ;;  %s1592_s21 = sphi %s1641_s21, %s2389_s21  }
   0x3   : > { %p31_p1 = scmp.ge.s32.totalorder %s29_s24, 2  ;;  %p244_p2 = scmp.lt.s32.totalorder %s1600_s23, 3 }
   0x5   : > { %s2392_s24 = smov (%p31_p1, %s29_s24), 0  ;;  %p245_p3 = pnand %p1405_p0, %p244_p2 }
   0x7   : > { %248 = sbr.rel (%p245_p3) target bundleno = 652 (0x28c), region = 36 }
   0xe   : > { %s1406_s25 = sshll.u32 %s1592_s21, 2  ;;  %v2372_v0 = vmov 0.0   ;;  %v1603_v1 = vmov 0   ;;  %v358_v2 = vld [vmem:[%s2367_s2] sm:$0xff]  ;;  %v359_v3 = vld [vmem:[%s2367_s2 + $0x8] sm:$0xff]  ;;  %v360_v4 = vld [vmem:[%s2367_s2 + $0x10] sm:$0xff] }
   0xf   : > { %p297_p4 = scmp.lt.s32.totalorder %s1406_s25, 7  ;;  %487 = vmatprep.mubr.f32.mxu0 %v2372_v0  ;;  %1109 = vmatprep.mubr.f32.mxu1 %v2372_v0  ;;  %v361_v16 = vld [vmem:[%s2367_s2 + $0x18] sm:$0xff]  ;;  %v362_v18 = vld [vmem:[%s2367_s2 + $0x20] sm:$0xff]  ;;  %v363_v19 = vld [vmem:[%s2367_s2 + $0x28] sm:$0xff]  ;;  %vm374_vm0 = vcmask 261120   ;;  %s1412_s19 = sshll.u32 %s1592_s21, 1 }
  0x10   : > { %1568 = vset.pattern.permute.xlu0 %v1603_v1  ;;  %1569 = vset.pattern.permute.xlu1 %v1603_v1  ;;  %v342_v20 = vld [vmem:[%s2365_s0] sm:$0xff]  ;;  %v364_v21 = vld [vmem:[%s2367_s2 + $0x30] sm:$0xff]  ;;  %v365_v22 = vld [vmem:[%s2367_s2 + $0x38] sm:$0xff]  ;;  %p2202_p5 = scmp.lt.s32.totalorder %s1412_s19, 3 }
  0x11   : > { %s2394_s25 = smov (!%p297_p4, %s1406_s25), 7  ;;  %586 = vperm.xlu0 %1568, %v358_v2   ;;  %596 = vperm.xlu1 %1569, %v360_v4   ;;  %v343_v23 = vld [vmem:[%s2365_s0 + $0x8] sm:$0xff]  ;;  %v366_v24 = vld [vmem:[%s2367_s2 + $0x40] sm:$0xff]  ;;  %v344_v26 = vld [vmem:[%s2365_s0 + $0x10] sm:$0xff] }
  0x12   : > { %s1498_s26 = sshll.u32 %s2394_s25, 4  ;;  %v367_v25 = vld [vmem:[%s2367_s2 + $0x48] sm:$0xff]  ;;  %v368_v27 = vld [vmem:[%s2367_s2 + $0x50] sm:$0xff]  ;;  %v369_v28 = vld [vmem:[%s2367_s2 + $0x58] sm:$0xff]  ;;  %s2396_s19 = smov (!%p2202_p5, %s1412_s19), 3 }
  0x13   : > { %s1675_s7 = scalar_lea.vmem %s2368_s3, %s1498_s26  ;;  %v345_v29 = vld [vmem:[%s2365_s0 + $0x18] sm:$0xff]  ;;  %v370_v30 = vld [vmem:[%s2367_s2 + $0x60] sm:$0xff]  ;;  %v371_v31 = vld [vmem:[%s2367_s2 + $0x68] sm:$0xff]  ;;  %s323_s28 = scalar_lea.vmem %s2370_s5, %s2396_s19 }
  0x14   : > { %v1684_v5 = vld [vmem:[%s1675_s7 + $0x8] sm:$0xff]  ;;  %v1687_v6 = vld [vmem:[%s1675_s7 + $0x18] sm:$0xff]  ;;  %v1690_v7 = vld [vmem:[%s1675_s7] sm:$0xff]  ;;  %s2330_s16 = scalar_lea.vmem %s2369_s4, %s1498_s26  ;;  %s1414_s25 = sshll.u32 %s2396_s19, 1 }
  0x15   : > { %v1500_v8 = vpack.c.bf16 %v1687_v6, %v1684_v5  ;;  %v1695_v9 = vld [vmem:[%s1675_s7 + $0x10] sm:$0xff]  ;;  %v1698_v10 = vld [vmem:[%s1675_s7 + $0x28] sm:$0xff]  ;;  %v1701_v11 = vld [vmem:[%s1675_s7 + $0x38] sm:$0xff]  ;;  %591 = vperm.xlu0 %1568, %v359_v3   ;;  %601 = vperm.xlu1 %1569, %v361_v16   ;;  %s331_s17 = scalar_lea.vmem %s2371_s6, %s1414_s25 }
  0x16   : > { %v1502_v12 = vpack.c.bf16 %v1695_v9, %v1690_v7  ;;  %v1504_v13 = vpack.c.bf16 %v1701_v11, %v1698_v10  ;;  %v1708_v14 = vld [vmem:[%s1675_s7 + $0x20] sm:$0xff]  ;;  %v1711_v15 = vld [vmem:[%s1675_s7 + $0x30] sm:$0xff]  ;;  %v373_v34 = vld [vmem:[%s2367_s2 + $0x78] sm:$0xff] }
  0x17   : > { %1501 = vmatprep.subr.bf16.mxu0 %v1500_v8  ;;  %v1506_v17 = vpack.c.bf16 %v1711_v15, %v1708_v14  ;;  %v346_v32 = vld [vmem:[%s2365_s0 + $0x20] sm:$0xff]  ;;  %v372_v33 = vld [vmem:[%s2367_s2 + $0x70] sm:$0xff]  ;;  %v347_v35 = vld [vmem:[%s2365_s0 + $0x28] sm:$0xff] }
  0x18   : > { %1503 = vmatpush1.bf16.msra.mxu0 %v1502_v12  ;;  %v348_v36 = vld [vmem:[%s2365_s0 + $0x30] sm:$0xff]  ;;  %v349_v37 = vld [vmem:[%s2365_s0 + $0x38] sm:$0xff]  ;;  %v350_v38 = vld [vmem:[%s2365_s0 + $0x40] sm:$0xff] }
  0x19   : > { %1505 = vmatprep.subr.bf16.mxu0 %v1504_v13  ;;  %606 = vperm.xlu0 %1568, %v362_v18   ;;  %v351_v39 = vld [vmem:[%s2365_s0 + $0x48] sm:$0xff]  ;;  %v352_v40 = vld [vmem:[%s2365_s0 + $0x50] sm:$0xff]  ;;  %v353_v41 = vld [vmem:[%s2365_s0 + $0x58] sm:$0xff] }
  0x1a   : > { %611 = vperm.xlu1 %1569, %v363_v19   ;;  %v354_v42 = vld [vmem:[%s2365_s0 + $0x60] sm:$0xff]  ;;  %v355_v43 = vld [vmem:[%s2365_s0 + $0x68] sm:$0xff]  ;;  %v356_v44 = vld [vmem:[%s2365_s0 + $0x70] sm:$0xff] }
  0x1b   : > { %v357_v45 = vld [vmem:[%s2365_s0 + $0x78] sm:$0xff] }
  0x1c   : > { %1507 = vmatpush1.bf16.msra.mxu0 %v1506_v17 }
  0x1d   : > { %616 = vperm.xlu0 %1568, %v364_v21  }
  0x1e   : > { %621 = vperm.xlu1 %1569, %v365_v22  }
  0x1f   : > { %1415 = vmatmul.mubr.msk.f32.vlgmr.msra.gmra.mrb[0].mxu0 %vm374_vm0, %v342_v20 }
  0x20   : > { %493 = vmatprep.mubr.f32.mxu0 %v2372_v0 }
  0x21   : > { %626 = vperm.xlu0 %1568, %v366_v24  }
  0x22   : > { %631 = vperm.xlu1 %1569, %v367_v25  }
  0x23   : > { %1416 = vmatmul.mubr.msk.f32.gmra.mrb[2].mxu0 %vm374_vm0, %v343_v23 }
  0x24   : > { %499 = vmatprep.mubr.f32.mxu0 %v2372_v0 }
  0x25   : > { %636 = vperm.xlu0 %1568, %v368_v27  }
  0x26   : > { %641 = vperm.xlu1 %1569, %v369_v28  }
  0x27   : > { %1417 = vmatmul.mubr.msk.f32.gmra.mrb[4].mxu0 %vm374_vm0, %v344_v26 }
  0x28   : > { %505 = vmatprep.mubr.f32.mxu0 %v2372_v0 }
  0x29   : > { %646 = vperm.xlu0 %1568, %v370_v30  }
  0x2a   : > { %651 = vperm.xlu1 %1569, %v371_v31  }
  0x2b   : > { %1418 = vmatmul.mubr.msk.f32.gmra.mrb[6].mxu0 %vm374_vm0, %v345_v29 }
  0x2c   : > { %511 = vmatprep.mubr.f32.mxu0 %v2372_v0 }
  0x2d   : > { %656 = vperm.xlu0 %1568, %v372_v33  }
  0x2e   : > { %661 = vperm.xlu1 %1569, %v373_v34  }
  0x2f   : > { %1419 = vmatmul.mubr.msk.f32.gmra.mrb[8].mxu0 %vm374_vm0, %v346_v32 }
  0x30   : > { %517 = vmatprep.mubr.f32.mxu0 %v2372_v0 }
  0x33   : > { %1420 = vmatmul.mubr.msk.f32.gmra.mrb[10].mxu0 %vm374_vm0, %v347_v35 }
  0x34   : > { %523 = vmatprep.mubr.f32.mxu0 %v2372_v0 }
  0x37   : > { %1421 = vmatmul.mubr.msk.f32.gmra.mrb[12].mxu0 %vm374_vm0, %v348_v36 }
  0x38   : > { %529 = vmatprep.mubr.f32.mxu0 %v2372_v0 }
  0x3b   : > { %1422 = vmatmul.mubr.msk.f32.gmra.mrb[14].mxu0 %vm374_vm0, %v349_v37 }
  0x3c   : > { %535 = vmatprep.mubr.f32.mxu0 %v2372_v0 }
  0x3f   : > { %1423 = vmatmul.mubr.msk.f32.gmra.mrb[16].mxu0 %vm374_vm0, %v350_v38 }
  0x40   : > { %541 = vmatprep.mubr.f32.mxu0 %v2372_v0 }
  0x43   : > { %1424 = vmatmul.mubr.msk.f32.gmra.mrb[18].mxu0 %vm374_vm0, %v351_v39 }
  0x44   : > { %547 = vmatprep.mubr.f32.mxu0 %v2372_v0 }
  0x47   : > { %1425 = vmatmul.mubr.msk.f32.gmra.mrb[20].mxu0 %vm374_vm0, %v352_v40 }
  0x48   : > { %553 = vmatprep.mubr.f32.mxu0 %v2372_v0 }
  0x4b   : > { %1426 = vmatmul.mubr.msk.f32.gmra.mrb[22].mxu0 %vm374_vm0, %v353_v41 }
  0x4c   : > { %559 = vmatprep.mubr.f32.mxu0 %v2372_v0 }
  0x4f   : > { %1427 = vmatmul.mubr.msk.f32.gmra.mrb[24].mxu0 %vm374_vm0, %v354_v42 }
  0x50   : > { %565 = vmatprep.mubr.f32.mxu0 %v2372_v0 }
  0x53   : > { %1428 = vmatmul.mubr.msk.f32.gmra.mrb[26].mxu0 %vm374_vm0, %v355_v43 }
  0x54   : > { %571 = vmatprep.mubr.f32.mxu0 %v2372_v0 }
  0x57   : > { %1429 = vmatmul.mubr.msk.f32.gmra.mrb[28].mxu0 %vm374_vm0, %v356_v44 }
  0x58   : > { %577 = vmatprep.mubr.f32.mxu0 %v2372_v0 }
  0x5b   : > { %1430 = vmatmul.mubr.msk.f32.gmra.mrb[30].mxu0 %vm374_vm0, %v357_v45 }
  0x90   : > { %v587_v46 = vpop.permute.xlu0 %586  ;;  %v597_v52 = vpop.permute.xlu1 %596 }
  0x94   : > { %v592_v51 = vpop.permute.xlu0 %591  ;;  %v602_v58 = vpop.permute.xlu1 %601 }
  0x98   : > { %v607_v2 = vpop.permute.xlu0 %606 }
  0x99   : > { %v612_v19 = vpop.permute.xlu1 %611 }
  0x9c   : > { %v617_v31 = vpop.permute.xlu0 %616 }
  0x9d   : > { %v622_v41 = vpop.permute.xlu1 %621 }
  0xf2   : > { %v489_v47 = vpop.f32.mrb[0].mxu0 }
  0xf3   : > { %v491_v48 = vpop.f32.mrb[1].mxu0  ;;  %v1835_v56 = vsub.f32 %v587_v46, %v489_v47 }
  0xf4   : > { %v1849_v13 = vsub.f32 %v587_v46, %v491_v48 }
  0xf6   : > { %v495_v49 = vpop.f32.mrb[2].mxu0 }
  0xf7   : > { %v497_v50 = vpop.f32.mrb[3].mxu0  ;;  %v1833_v54 = vsub.f32 %v592_v51, %v495_v49 }
  0xf8   : > { %v1844_v1 = vsub.f32 %v592_v51, %v497_v50 }
  0xf9   : > { %v696_v60 = vadd.f32 %v1833_v54, %v1835_v56 }
  0xfa   : > { %v501_v53 = vpop.f32.mrb[4].mxu0  ;;  %v717_v18 = vadd.f32 %v1844_v1, %v1849_v13 }
  0xfb   : > { %v503_v55 = vpop.f32.mrb[5].mxu0  ;;  %v1837_v57 = vsub.f32 %v597_v52, %v501_v53 }
  0xfc   : > { %v1851_v16 = vsub.f32 %v597_v52, %v503_v55  ;;  %v627_v52 = vpop.permute.xlu0 %626 }
  0xfd   : > { %v697_v63 = vadd.f32 %v696_v60, %v1837_v57  ;;  %v740_v27 = vmin.f32 %v1835_v56, %v1837_v57 }
  0xfe   : > { %v507_v59 = vpop.f32.mrb[6].mxu0  ;;  %v718_v25 = vadd.f32 %v717_v18, %v1851_v16  ;;  %v761_v46 = vmin.f32 %v1849_v13, %v1851_v16 }
  0xff   : > { %v1841_v61 = vsub.f32 %v602_v58, %v507_v59  ;;  %v509_v62 = vpop.f32.mrb[7].mxu0 }
 0x100   : > { %v1856_v20 = vsub.f32 %v602_v58, %v509_v62 }
 0x101   : > { %v698_v4 = vadd.f32 %v697_v63, %v1841_v61  ;;  %v741_v22 = vmin.f32 %v1833_v54, %v1841_v61 }
 0x102   : > { %v513_v3 = vpop.f32.mrb[8].mxu0  ;;  %v719_v30 = vadd.f32 %v718_v25, %v1856_v20  ;;  %v762_v60 = vmin.f32 %v1844_v1, %v1856_v20 }
 0x103   : > { %v1847_v8 = vsub.f32 %v607_v2, %v513_v3  ;;  %v515_v12 = vpop.f32.mrb[9].mxu0 }
 0x104   : > { %v1863_v26 = vsub.f32 %v607_v2, %v515_v12 }
 0x105   : > { %v699_v17 = vadd.f32 %v698_v4, %v1847_v8  ;;  %v742_v34 = vmin.f32 %v740_v27, %v1847_v8  ;;  %v632_v4 = vpop.permute.xlu1 %631 }
 0x106   : > { %v519_v21 = vpop.f32.mrb[10].mxu0  ;;  %v720_v37 = vadd.f32 %v719_v30, %v1863_v26  ;;  %v763_v51 = vmin.f32 %v761_v46, %v1863_v26 }
 0x107   : > { %v1860_v23 = vsub.f32 %v612_v19, %v519_v21  ;;  %v521_v24 = vpop.f32.mrb[11].mxu0 }
 0x108   : > { %v1870_v32 = vsub.f32 %v612_v19, %v521_v24 }
 0x109   : > { %v700_v28 = vadd.f32 %v699_v17, %v1860_v23  ;;  %v743_v29 = vmin.f32 %v741_v22, %v1860_v23 }
 0x10a   : > { %v525_v33 = vpop.f32.mrb[12].mxu0  ;;  %v721_v42 = vadd.f32 %v720_v37, %v1870_v32  ;;  %v764_v12 = vmin.f32 %v762_v60, %v1870_v32 }
 0x10b   : > { %v1873_v35 = vsub.f32 %v617_v31, %v525_v33  ;;  %v527_v36 = vpop.f32.mrb[13].mxu0 }
 0x10c   : > { %v1876_v38 = vsub.f32 %v617_v31, %v527_v36 }
 0x10d   : > { %v701_v39 = vadd.f32 %v700_v28, %v1873_v35  ;;  %v744_v40 = vmin.f32 %v742_v34, %v1873_v35 }
 0x10e   : > { %v531_v43 = vpop.f32.mrb[14].mxu0  ;;  %v722_v47 = vadd.f32 %v721_v42, %v1876_v38  ;;  %v765_v62 = vmin.f32 %v763_v51, %v1876_v38 }
 0x10f   : > { %v1881_v44 = vsub.f32 %v622_v41, %v531_v43  ;;  %v533_v45 = vpop.f32.mrb[15].mxu0 }
 0x110   : > { %v1886_v48 = vsub.f32 %v622_v41, %v533_v45  ;;  %v642_v41 = vpop.permute.xlu1 %641 }
 0x111   : > { %v702_v49 = vadd.f32 %v701_v39, %v1881_v44  ;;  %v745_v50 = vmin.f32 %v743_v29, %v1881_v44  ;;  %v637_v29 = vpop.permute.xlu0 %636 }
 0x112   : > { %v723_v53 = vadd.f32 %v722_v47, %v1886_v48  ;;  %v537_v55 = vpop.f32.mrb[16].mxu0  ;;  %v766_v24 = vmin.f32 %v764_v12, %v1886_v48 }
 0x113   : > { %v1892_v58 = vsub.f32 %v627_v52, %v537_v55  ;;  %v539_v59 = vpop.f32.mrb[17].mxu0 }
 0x114   : > { %v1897_v63 = vsub.f32 %v627_v52, %v539_v59  ;;  %v652_v12 = vpop.permute.xlu1 %651 }
 0x115   : > { %v703_v2 = vadd.f32 %v702_v49, %v1892_v58  ;;  %v746_v3 = vmin.f32 %v744_v40, %v1892_v58  ;;  %v647_v52 = vpop.permute.xlu0 %646 }
 0x116   : > { %v724_v17 = vadd.f32 %v723_v53, %v1897_v63  ;;  %v767_v18 = vmin.f32 %v765_v62, %v1897_v63  ;;  %v543_v19 = vpop.f32.mrb[18].mxu0 }
 0x117   : > { %v1904_v21 = vsub.f32 %v632_v4, %v543_v19  ;;  %v545_v22 = vpop.f32.mrb[19].mxu0 }
 0x118   : > { %v1907_v25 = vsub.f32 %v632_v4, %v545_v22 }
 0x119   : > { %v704_v27 = vadd.f32 %v703_v2, %v1904_v21  ;;  %v747_v28 = vmin.f32 %v745_v50, %v1904_v21 }
 0x11a   : > { %v725_v30 = vadd.f32 %v724_v17, %v1907_v25  ;;  %v768_v31 = vmin.f32 %v766_v24, %v1907_v25  ;;  %v549_v33 = vpop.f32.mrb[20].mxu0 }
 0x11b   : > { %v1913_v34 = vsub.f32 %v637_v29, %v549_v33  ;;  %v551_v36 = vpop.f32.mrb[21].mxu0 }
 0x11c   : > { %v1915_v37 = vsub.f32 %v637_v29, %v551_v36 }
 0x11d   : > { %v705_v39 = vadd.f32 %v704_v27, %v1913_v34  ;;  %v748_v40 = vmin.f32 %v746_v3, %v1913_v34 }
 0x11e   : > { %v726_v42 = vadd.f32 %v725_v30, %v1915_v37  ;;  %v769_v43 = vmin.f32 %v767_v18, %v1915_v37  ;;  %v555_v45 = vpop.f32.mrb[22].mxu0  ;;  %v657_v30 = vpop.permute.xlu0 %656 }
 0x11f   : > { %v1921_v46 = vsub.f32 %v642_v41, %v555_v45  ;;  %v557_v47 = vpop.f32.mrb[23].mxu0  ;;  %v662_v45 = vpop.permute.xlu1 %661 }
 0x120   : > { %v1923_v49 = vsub.f32 %v642_v41, %v557_v47 }
 0x121   : > { %v706_v50 = vadd.f32 %v705_v39, %v1921_v46  ;;  %v749_v51 = vmin.f32 %v747_v28, %v1921_v46 }
 0x122   : > { %v727_v53 = vadd.f32 %v726_v42, %v1923_v49  ;;  %v770_v55 = vmin.f32 %v768_v31, %v1923_v49  ;;  %v561_v59 = vpop.f32.mrb[24].mxu0 }
 0x123   : > { %v1929_v60 = vsub.f32 %v647_v52, %v561_v59  ;;  %v563_v62 = vpop.f32.mrb[25].mxu0 }
 0x124   : > { %v1931_v2 = vsub.f32 %v647_v52, %v563_v62 }
 0x125   : > { %v707_v3 = vadd.f32 %v706_v50, %v1929_v60  ;;  %v750_v4 = vmin.f32 %v748_v40, %v1929_v60 }
 0x126   : > { %v728_v17 = vadd.f32 %v727_v53, %v1931_v2  ;;  %v771_v18 = vmin.f32 %v769_v43, %v1931_v2  ;;  %v567_v19 = vpop.f32.mrb[26].mxu0 }
 0x127   : > { %v1937_v22 = vsub.f32 %v652_v12, %v567_v19  ;;  %v569_v24 = vpop.f32.mrb[27].mxu0 }
 0x128   : > { %v1939_v27 = vsub.f32 %v652_v12, %v569_v24 }
 0x129   : > { %v708_v28 = vadd.f32 %v707_v3, %v1937_v22  ;;  %v751_v29 = vmin.f32 %v749_v51, %v1937_v22 }
 0x12a   : > { %v729_v31 = vadd.f32 %v728_v17, %v1939_v27  ;;  %v772_v33 = vmin.f32 %v770_v55, %v1939_v27  ;;  %v573_v36 = vpop.f32.mrb[28].mxu0 }
 0x12b   : > { %v1945_v39 = vsub.f32 %v657_v30, %v573_v36  ;;  %v575_v40 = vpop.f32.mrb[29].mxu0 }
 0x12c   : > { %v1947_v41 = vsub.f32 %v657_v30, %v575_v40 }
 0x12d   : > { %v709_v42 = vadd.f32 %v708_v28, %v1945_v39  ;;  %v752_v43 = vmin.f32 %v750_v4, %v1945_v39  ;;  %v2374_v28 = vlaneseq }
 0x12e   : > { %v730_v47 = vadd.f32 %v729_v31, %v1947_v41  ;;  %v773_v50 = vmin.f32 %v771_v18, %v1947_v41  ;;  %v579_v51 = vpop.f32.mrb[30].mxu0 }
 0x12f   : > { %v1953_v52 = vsub.f32 %v662_v45, %v579_v51  ;;  %v581_v53 = vpop.f32.mrb[31].mxu0 }
 0x130   : > { %v1955_v55 = vsub.f32 %v662_v45, %v581_v53 }
 0x131   : > { %v1958_v59 = vadd.f32 %v709_v42, %v1953_v52  ;;  %v753_v62 = vmin.f32 %v751_v29, %v1953_v52  ;;  %v1966_v42 = vshrl.u32 %v2374_v28, 7 }
 0x132   : > { %v1962_v3 = vadd.f32 %v730_v47, %v1955_v55  ;;  %v774_v4 = vmin.f32 %v772_v33, %v1955_v55 }
 0x133   : > { %2377 = vst [vmem:[#allocation2_spill] sm:$0xff] %v1958_v59  ;;  %v754_v12 = vmin.f32 %v752_v43, %v753_v62  ;;  %v1971_v47 = vadd.s32 8, %v1966_v42  ;;  %v1974_v33 = vadd.s32 16, %v1966_v42  ;;  %v1977_v43 = vadd.s32 24, %v1966_v42 }
 0x134   : > { %2378 = vst [vmem:[#allocation3_spill] sm:$0xff] %v1962_v3  ;;  %v775_v17 = vmin.f32 %v773_v50, %v774_v4  ;;  %v1980_v50 = vadd.s32 32, %v1966_v42  ;;  %v1983_v53 = vadd.s32 40, %v1966_v42  ;;  %v1986_v62 = vadd.s32 48, %v1966_v42 }
 0x135   : > { %v755_v19 = vrot.slane %v754_v12, 4 }
 0x136   : > { %v776_v18 = vrot.slane %v775_v17, 4 }
 0x137   : > { %v756_v24 = vmin.f32 %v754_v12, %v755_v19  ;;  %v2021_v12 = vadd.s32 56, %v1966_v42  ;;  %v2027_v19 = vadd.s32 72, %v1966_v42 }
 0x138   : > { %v777_v30 = vmin.f32 %v775_v17, %v776_v18  ;;  %v2024_v17 = vadd.s32 64, %v1966_v42  ;;  %v2030_v18 = vadd.s32 80, %v1966_v42 }
 0x139   : > { %v757_v31 = vrot.slane %v756_v24, 2 }
 0x13a   : > { %v778_v36 = vrot.slane %v777_v30, 2 }
 0x13b   : > { %v758_v40 = vmin.f32 %v756_v24, %v757_v31 }
 0x13c   : > { %v779_v45 = vmin.f32 %v777_v30, %v778_v36 }
 0x13d   : > { %v759_v29 = vrot.slane %v758_v40, 1 }
 0x13e   : > { %v780_v4 = vrot.slane %v779_v45, 1 }
 0x13f   : > { %v1968_v51 = vmin.f32 %v758_v40, %v759_v29  ;;  %v2049_v40 = vadd.s32 88, %v1966_v42  ;;  %v2055_v29 = vadd.s32 104, %v1966_v42 }
 0x140   : > { %v2071_v28 = vmin.f32 %v779_v45, %v780_v4 }
 0x141   : > { %vm799_vm1 = vcmp.eq.f32.partialorder %v1835_v56, %v1968_v51  ;;  %vm801_vm2 = vcmp.eq.f32.partialorder %v1833_v54, %v1968_v51  ;;  %vm803_vm3 = vcmp.eq.f32.partialorder %v1837_v57, %v1968_v51  ;;  %vm805_vm4 = vcmp.eq.f32.partialorder %v1841_v61, %v1968_v51 }
 0x142   : > { %vm807_vm5 = vcmp.eq.f32.partialorder %v1847_v8, %v1968_v51  ;;  %vm809_vm6 = vcmp.eq.f32.partialorder %v1860_v23, %v1968_v51  ;;  %vm811_vm7 = vcmp.eq.f32.partialorder %v1873_v35, %v1968_v51  ;;  %vm813_vm8 = vcmp.eq.f32.partialorder %v1881_v44, %v1968_v51 }
 0x143   : > { %vm815_vm9 = vcmp.eq.f32.partialorder %v1892_v58, %v1968_v51  ;;  %vm817_vm10 = vcmp.eq.f32.partialorder %v1904_v21, %v1968_v51  ;;  %vm819_vm11 = vcmp.eq.f32.partialorder %v1913_v34, %v1968_v51  ;;  %vm821_vm12 = vcmp.eq.f32.partialorder %v1921_v46, %v1968_v51 }
 0x144   : > { %vm823_vm13 = vcmp.eq.f32.partialorder %v1929_v60, %v1968_v51  ;;  %vm825_vm14 = vcmp.eq.f32.partialorder %v1937_v22, %v1968_v51  ;;  %vm827_vm15 = vcmp.eq.f32.partialorder %v1945_v39, %v1968_v51  ;;  %vm829_vm0 = vcmp.eq.f32.partialorder %v1953_v52, %v1968_v51 }
 0x145   : > { %v831_v24 = vsel %vm799_vm1, %v1966_v42, 128  ;;  %v833_v30 = vsel %vm801_vm2, %v1971_v47, 128  ;;  %v835_v31 = vsel %vm803_vm3, %v1974_v33, 128  ;;  %v837_v36 = vsel %vm805_vm4, %v1977_v43, 128 }
 0x146   : > { %v2052_v56 = vadd.s32 96, %v1966_v42  ;;  %v2058_v54 = vadd.s32 112, %v1966_v42  ;;  %v2061_v57 = vadd.s32 120, %v1966_v42  ;;  %v839_v61 = vsel %vm807_vm5, %v1980_v50, 128 }
 0x147   : > { %v841_v0 = vsel %vm809_vm6, %v1983_v53, 128  ;;  %v843_v3 = vsel %vm811_vm7, %v1986_v62, 128  ;;  %v845_v59 = vsel %vm813_vm8, %v2021_v12, 128  ;;  %vm863_vm1 = vcmp.lt.s32.totalorder %v831_v24, %v835_v31 }
 0x148   : > { %vm865_vm2 = vcmp.lt.s32.totalorder %v833_v30, %v837_v36  ;;  %v847_v8 = vsel %vm815_vm9, %v2024_v17, 128  ;;  %v849_v23 = vsel %vm817_vm10, %v2027_v19, 128  ;;  %v864_v45 = vsel %vm863_vm1, %v831_v24, %v835_v31 }
 0x149   : > { %v866_v35 = vsel %vm865_vm2, %v833_v30, %v837_v36  ;;  %v851_v44 = vsel %vm819_vm11, %v2030_v18, 128  ;;  %v853_v4 = vsel %vm821_vm12, %v2049_v40, 128  ;;  %vm867_vm3 = vcmp.lt.s32.totalorder %v864_v45, %v839_v61 }
 0x14a   : > { %vm869_vm4 = vcmp.lt.s32.totalorder %v866_v35, %v841_v0  ;;  %v855_v58 = vsel %vm823_vm13, %v2052_v56, 128  ;;  %v857_v21 = vsel %vm825_vm14, %v2055_v29, 128  ;;  %v868_v24 = vsel %vm867_vm3, %v864_v45, %v839_v61 }
 0x14b   : > { %v870_v34 = vsel %vm869_vm4, %v866_v35, %v841_v0  ;;  %vm871_vm5 = vcmp.lt.s32.totalorder %v868_v24, %v843_v3  ;;  %vm812_vm7 = vcmp.eq.f32.partialorder %v1876_v38, %v2071_v28  ;;  %vm814_vm8 = vcmp.eq.f32.partialorder %v1886_v48, %v2071_v28 }
 0x14c   : > { %vm873_vm6 = vcmp.lt.s32.totalorder %v870_v34, %v845_v59  ;;  %v872_v46 = vsel %vm871_vm5, %v868_v24, %v843_v3  ;;  %vm816_vm9 = vcmp.eq.f32.partialorder %v1897_v63, %v2071_v28  ;;  %vm818_vm10 = vcmp.eq.f32.partialorder %v1907_v25, %v2071_v28 }
 0x14d   : > { %v874_v30 = vsel %vm873_vm6, %v870_v34, %v845_v59  ;;  %vm875_vm11 = vcmp.lt.s32.totalorder %v872_v46, %v847_v8  ;;  %vm828_vm5 = vcmp.eq.f32.partialorder %v1947_v41, %v2071_v28  ;;  %vm804_vm2 = vcmp.eq.f32.partialorder %v1851_v16, %v2071_v28 }
 0x14e   : > { %vm877_vm12 = vcmp.lt.s32.totalorder %v874_v30, %v849_v23  ;;  %v876_v0 = vsel %vm875_vm11, %v872_v46, %v847_v8  ;;  %vm800_vm11 = vcmp.eq.f32.partialorder %v1849_v13, %v2071_v28  ;;  %vm806_vm13 = vcmp.eq.f32.partialorder %v1856_v20, %v2071_v28 }
 0x14f   : > { %v878_v60 = vsel %vm877_vm12, %v874_v30, %v849_v23  ;;  %vm879_vm3 = vcmp.lt.s32.totalorder %v876_v0, %v851_v44  ;;  %vm802_vm12 = vcmp.eq.f32.partialorder %v1844_v1, %v2071_v28  ;;  %v859_v3 = vsel %vm827_vm15, %v2058_v54, 128 }
 0x150   : > { %vm881_vm4 = vcmp.lt.s32.totalorder %v878_v60, %v853_v4  ;;  %v880_v22 = vsel %vm879_vm3, %v876_v0, %v851_v44  ;;  %v861_v13 = vsel %vm829_vm0, %v2061_v57, 128  ;;  %v832_v36 = vsel %vm800_vm11, %v1966_v42, 128 }
 0x151   : > { %v882_v59 = vsel %vm881_vm4, %v878_v60, %v853_v4  ;;  %vm883_vm1 = vcmp.lt.s32.totalorder %v880_v22, %v855_v58  ;;  %v834_v16 = vsel %vm802_vm12, %v1971_v47, 128  ;;  %v836_v8 = vsel %vm804_vm2, %v1974_v33, 128 }
 0x152   : > { %vm885_vm14 = vcmp.lt.s32.totalorder %v882_v59, %v857_v21  ;;  %v884_v31 = vsel %vm883_vm1, %v880_v22, %v855_v58  ;;  %v838_v39 = vsel %vm806_vm13, %v1977_v43, 128  ;;  %vm808_vm6 = vcmp.eq.f32.partialorder %v1863_v26, %v2071_v28 }
 0x153   : > { %v886_v1 = vsel %vm885_vm14, %v882_v59, %v857_v21  ;;  %vm887_vm3 = vcmp.lt.s32.totalorder %v884_v31, %v859_v3  ;;  %vm810_vm0 = vcmp.eq.f32.partialorder %v1870_v32, %v2071_v28  ;;  %vm902_vm14 = vcmp.lt.s32.totalorder %v832_v36, %v836_v8 }
 0x154   : > { %vm889_vm4 = vcmp.lt.s32.totalorder %v886_v1, %v861_v13  ;;  %v888_v61 = vsel %vm887_vm3, %v884_v31, %v859_v3  ;;  %vm904_vm1 = vcmp.lt.s32.totalorder %v834_v16, %v838_v39  ;;  %v840_v45 = vsel %vm808_vm6, %v1980_v50, 128 }
 0x155   : > { %v890_v20 = vsel %vm889_vm4, %v886_v1, %v861_v13  ;;  %v842_v35 = vsel %vm810_vm0, %v1983_v53, 128  ;;  %v903_v44 = vsel %vm902_vm14, %v832_v36, %v836_v8  ;;  %v905_v4 = vsel %vm904_vm1, %v834_v16, %v838_v39 }
 0x156   : > { %vm891_vm15 = vcmp.lt.s32.totalorder %v888_v61, %v890_v20  ;;  %v844_v58 = vsel %vm812_vm7, %v1986_v62, 128  ;;  %vm906_vm13 = vcmp.lt.s32.totalorder %v903_v44, %v840_v45  ;;  %vm908_vm11 = vcmp.lt.s32.totalorder %v905_v4, %v842_v35 }
 0x157   : > { %v892_v52 = vsel %vm891_vm15, %v888_v61, %v890_v20  ;;  %v846_v32 = vsel %vm814_vm8, %v2021_v12, 128  ;;  %v907_v21 = vsel %vm906_vm13, %v903_v44, %v840_v45  ;;  %v909_v24 = vsel %vm908_vm11, %v905_v4, %v842_v35 }
 0x158   : > { %v893_v23 = vrot.slane %v892_v52, 4  ;;  %vm910_vm6 = vcmp.lt.s32.totalorder %v907_v21, %v844_v58  ;;  %vm912_vm12 = vcmp.lt.s32.totalorder %v909_v24, %v846_v32  ;;  %v848_v46 = vsel %vm816_vm9, %v2024_v17, 128 }
 0x159   : > { %v850_v38 = vsel %vm818_vm10, %v2027_v19, 128  ;;  %v911_v30 = vsel %vm910_vm6, %v907_v21, %v844_v58  ;;  %v913_v0 = vsel %vm912_vm12, %v909_v24, %v846_v32  ;;  %vm2379_vm8 = vcmp.eq.f32.partialorder %v1915_v37, %v2071_v28 }
 0x15a   : > { %vm894_vm2 = vcmp.lt.s32.totalorder %v892_v52, %v893_v23  ;;  %v852_v48 = vsel %vm2379_vm8, %v2030_v18, 128  ;;  %vm914_vm3 = vcmp.lt.s32.totalorder %v911_v30, %v848_v46  ;;  %vm916_vm4 = vcmp.lt.s32.totalorder %v913_v0, %v850_v38 }
 0x15b   : > { %v895_v26 = vsel %vm894_vm2, %v892_v52, %v893_v23  ;;  %vm2380_vm9 = vcmp.eq.f32.partialorder %v1923_v49, %v2071_v28  ;;  %v915_v22 = vsel %vm914_vm3, %v911_v30, %v848_v46  ;;  %v917_v59 = vsel %vm916_vm4, %v913_v0, %v850_v38  ;;  %v2388_v46 = vld [vmem:[#allocation3_spill] sm:$0xff]  ;;  %v1570_v30 = vld [vmem:[%s1675_s7] sm:$0xff] }
 0x15c   : > { %v896_v34 = vrot.slane %v895_v26, 2  ;;  %v854_v63 = vsel %vm2380_vm9, %v2049_v40, 128  ;;  %vm941_vm10 = vcmp.lt.f32.partialorder %v1968_v51, inf  ;;  %vm918_vm15 = vcmp.lt.s32.totalorder %v915_v22, %v852_v48 }
 0x15d   : > { %vm920_vm0 = vcmp.lt.s32.totalorder %v917_v59, %v854_v63  ;;  %vm2381_vm14 = vcmp.eq.f32.partialorder %v1931_v2, %v2071_v28  ;;  %vm2382_vm1 = vcmp.eq.f32.partialorder %v1939_v27, %v2071_v28  ;;  %v919_v13 = vsel %vm918_vm15, %v915_v22, %v852_v48  ;;  %v1571_v48 = vld [vmem:[%s1675_s7 + $0x8] sm:$0xff] }
 0x15e   : > { %vm897_vm7 = vcmp.lt.s32.totalorder %v895_v26, %v896_v34  ;;  %v856_v37 = vsel %vm2381_vm14, %v2052_v56, 128  ;;  %v858_v3 = vsel %vm2382_vm1, %v2055_v29, 128  ;;  %v921_v49 = vsel %vm920_vm0, %v917_v59, %v854_v63 }
 0x15f   : > { %v898_v60 = vsel %vm897_vm7, %v895_v26, %v896_v34  ;;  %v860_v51 = vsel %vm828_vm5, %v2058_v54, 128  ;;  %vm922_vm13 = vcmp.lt.s32.totalorder %v919_v13, %v856_v37  ;;  %vm924_vm11 = vcmp.lt.s32.totalorder %v921_v49, %v858_v3 }
 0x160   : > { %v899_v25 = vrot.slane %v898_v60, 1  ;;  %vm2383_vm6 = vcmp.eq.f32.partialorder %v1955_v55, %v2071_v28  ;;  %v923_v1 = vsel %vm922_vm13, %v919_v13, %v856_v37  ;;  %v925_v36 = vsel %vm924_vm11, %v921_v49, %v858_v3 }
 0x161   : > { %v862_v2 = vsel %vm2383_vm6, %v2061_v57, 128  ;;  %vm926_vm12 = vcmp.lt.s32.totalorder %v923_v1, %v860_v51  ;;  %v1604_v23 = vmov 1966171168   ;;  %vm942_vm9 = vcmp.lt.f32.partialorder %v2071_v28, inf }
 0x162   : > { %vm900_vm2 = vcmp.lt.s32.totalorder %v898_v60, %v899_v25  ;;  %vm928_vm7 = vcmp.lt.s32.totalorder %v925_v36, %v862_v2  ;;  %v927_v16 = vsel %vm926_vm12, %v923_v1, %v860_v51  ;;  %v1144_v55 = vunpack.c.l.s4 %v1604_v23  ;;  %v1573_v51 = vld [vmem:[%s1675_s7 + $0x18] sm:$0xff] }
 0x163   : > { %v901_v31 = vsel %vm900_vm2, %v898_v60, %v899_v25  ;;  %v929_v61 = vsel %vm928_vm7, %v925_v36, %v862_v2  ;;  %v1605_v28 = vmov 1.0|1.0   ;;  %v1167_v26 = vmul.f32 %v1698_v10, %v1698_v10  ;;  %v1572_v25 = vld [vmem:[%s1675_s7 + $0x10] sm:$0xff] }
 0x164   : > { %v2192_v27 = vsel %vm941_vm10, %v901_v31, 0  ;;  %vm930_vm8 = vcmp.lt.s32.totalorder %v927_v16, %v929_v61  ;;  %v1145_v44 = vunpack.c.0.s8 %v1144_v55  ;;  %v732_v38 = vrot.slane %v2388_v46, 4 }
 0x165   : > { %v931_v41 = vsel %vm930_vm8, %v927_v16, %v929_v61  ;;  %vm945_vm10 = vcmp.eq.s32.totalorder %v1966_v42, %v2192_v27  ;;  %vm947_vm15 = vcmp.eq.s32.totalorder %v1971_v47, %v2192_v27  ;;  %vm949_vm12 = vcmp.eq.s32.totalorder %v1974_v33, %v2192_v27 }
 0x166   : > { %v932_v20 = vrot.slane %v931_v41, 4  ;;  %vm1510_vm11 = vmpackc.low %vm947_vm15, %vm945_vm10  ;;  %v1148_v58 = vsub.s32 %v1145_v44, %v1966_v42  ;;  %vm951_vm7 = vcmp.eq.s32.totalorder %v1977_v43, %v2192_v27  ;;  %vm955_vm10 = vcmp.eq.s32.totalorder %v1983_v53, %v2192_v27 }
 0x167   : > { %v733_v49 = vadd.f32 %v732_v38, %v2388_v46 }
 0x168   : > { %vm933_vm5 = vcmp.lt.s32.totalorder %v931_v41, %v932_v20 }
 0x169   : > { %v934_v8 = vsel %vm933_vm5, %v931_v41, %v932_v20  ;;  %v734_v55 = vrot.slane %v733_v49, 2 }
 0x16a   : > { %v935_v39 = vrot.slane %v934_v8, 2 }
 0x16c   : > { %vm936_vm3 = vcmp.lt.s32.totalorder %v934_v8, %v935_v39 }
 0x16d   : > { %v937_v52 = vsel %vm936_vm3, %v934_v8, %v935_v39  ;;  %vm1514_vm3 = vmpackc.low %vm951_vm7, %vm949_vm12  ;;  %v1574_v8 = vld [vmem:[%s1675_s7 + $0x20] sm:$0xff] }
 0x16e   : > { %v938_v45 = vrot.slane %v937_v52, 1 }
 0x170   : > { %vm939_vm4 = vcmp.lt.s32.totalorder %v937_v52, %v938_v45 }
 0x171   : > { %v940_v35 = vsel %vm939_vm4, %v937_v52, %v938_v45 }
 0x172   : > { %v2196_v4 = vsel %vm942_vm9, %v940_v35, 0  ;;  %vm953_vm9 = vcmp.eq.s32.totalorder %v1980_v50, %v2192_v27  ;;  %v1575_v35 = vld [vmem:[%s1675_s7 + $0x28] sm:$0xff] }
 0x173   : > { %vm946_vm0 = vcmp.eq.s32.totalorder %v1966_v42, %v2196_v4  ;;  %vm948_vm14 = vcmp.eq.s32.totalorder %v1971_v47, %v2196_v4  ;;  %vm950_vm1 = vcmp.eq.s32.totalorder %v1974_v33, %v2196_v4  ;;  %vm952_vm2 = vcmp.eq.s32.totalorder %v1977_v43, %v2196_v4 }
 0x174   : > { %vm1508_vm13 = vmpackc.low %vm948_vm14, %vm946_vm0  ;;  %vm954_vm8 = vcmp.eq.s32.totalorder %v1980_v50, %v2196_v4  ;;  %vm956_vm5 = vcmp.eq.s32.totalorder %v1983_v53, %v2196_v4  ;;  %v1142_v42 = vcombine.low %v2192_v27, %v2196_v4  ;;  %v2385_v33 = vlaneseq  ;;  %v1041_v50 = vld [vmem:[%s2366_s1] sm:$0xff] }
 0x175   : > { %1509 = vmatprep.subr.msk.bf16.mxu1 %vm1508_vm13, %v1605_v28  ;;  %vm1512_vm6 = vmpackc.low %vm952_vm2, %vm950_vm1  ;;  %vm958_vm0 = vcmp.eq.s32.totalorder %v1986_v62, %v2196_v4  ;;  %vm960_vm14 = vcmp.eq.s32.totalorder %v2021_v12, %v2196_v4  ;;  %vm957_vm13 = vcmp.eq.s32.totalorder %v1986_v62, %v2192_v27  ;;  %vm964_vm12 = vcmp.eq.s32.totalorder %v2027_v19, %v2196_v4  ;;  %v1042_v62 = vld [vmem:[%s2366_s1 + $0x8] sm:$0xff] }
 0x176   : > { %1511 = vmatpush1.bf16.msk.msra.mxu1 %vm1510_vm11, %v1605_v28  ;;  %v1149_v47 = vrot.slane %v1142_v42, %v1148_v58  ;;  %vm1516_vm4 = vmpackc.low %vm956_vm5, %vm954_vm8  ;;  %vm1159_vm15 = vcmp.lt.s32.totalorder %v2385_v33, 256  ;;  %vm959_vm11 = vcmp.eq.s32.totalorder %v2021_v12, %v2192_v27  ;;  %vm961_vm5 = vcmp.eq.s32.totalorder %v2024_v17, %v2192_v27  ;;  %v1043_v12 = vld [vmem:[%s2366_s1 + $0x10] sm:$0xff] }
 0x177   : > { %1513 = vmatprep.subr.msk.bf16.mxu1 %vm1512_vm6, %v1605_v28  ;;  %vm1518_vm1 = vmpackc.low %vm955_vm10, %vm953_vm9  ;;  %vm962_vm6 = vcmp.eq.s32.totalorder %v2024_v17, %v2196_v4  ;;  %vm968_vm9 = vcmp.eq.s32.totalorder %v2049_v40, %v2196_v4  ;;  %v2386_v53 = vmov 0.0   ;;  %v1044_v17 = vld [vmem:[%s2366_s1 + $0x18] sm:$0xff] }
 0x178   : > { %v1156_v43 = vrot.slane %v1149_v47, %v1148_v58  ;;  %vm1520_vm2 = vmpackc.low %vm960_vm14, %vm958_vm0  ;;  %vm965_vm0 = vcmp.eq.s32.totalorder %v2030_v18, %v2192_v27  ;;  %vm967_vm14 = vcmp.eq.s32.totalorder %v2049_v40, %v2192_v27  ;;  %v1163_v40 = vmul.f32 %v1684_v5, %v1684_v5 }
 0x179   : > { %vm1522_vm7 = vmpackc.low %vm959_vm11, %vm957_vm13  ;;  %v1169_v5 = vmul.f32 %v1701_v11, %v1701_v11 }
 0x17a   : > { %1515 = vmatpush1.bf16.msk.msra.mxu1 %vm1514_vm3, %v1605_v28  ;;  %1161 = vst.msk [vmem:[%s323_s28] sm:$0x3] %vm1159_vm15, %v1156_v43  ;;  %vm1524_vm8 = vmpackc.low %vm964_vm12, %vm962_vm6  ;;  %vm963_vm3 = vcmp.eq.s32.totalorder %v2027_v19, %v2192_v27  ;;  %vm969_vm6 = vcmp.eq.s32.totalorder %v2052_v56, %v2192_v27  ;;  %vm971_vm12 = vcmp.eq.s32.totalorder %v2055_v29, %v2192_v27  ;;  %v1576_v43 = vld [vmem:[%s1675_s7 + $0x30] sm:$0xff] }
 0x17b   : > { %1517 = vmatprep.subr.msk.bf16.mxu1 %vm1516_vm4, %v1605_v28  ;;  %vm966_vm4 = vcmp.eq.s32.totalorder %v2030_v18, %v2196_v4  ;;  %vm1526_vm10 = vmpackc.low %vm963_vm3, %vm961_vm5  ;;  %v1162_v19 = vmul.f32 %v1690_v7, %v1690_v7  ;;  %v1164_v18 = vmul.f32 %v1695_v9, %v1695_v9  ;;  %v1168_v7 = vmul.f32 %v1711_v15, %v1711_v15  ;;  %v2387_v15 = vld [vmem:[#allocation2_spill] sm:$0xff] }
 0x17c   : > { %vm1528_vm15 = vmpackc.low %vm968_vm9, %vm966_vm4  ;;  %vm973_vm4 = vcmp.eq.s32.totalorder %v2058_v54, %v2192_v27  ;;  %vm975_vm9 = vcmp.eq.s32.totalorder %v2061_v57, %v2192_v27  ;;  %v711_v24 = vrot.slane %v2387_v15, 4 }
 0x17d   : > { %vm1530_vm13 = vmpackc.low %vm967_vm14, %vm965_vm0 }
 0x17e   : > { %1519 = vmatpush1.bf16.msk.msra.mxu1 %vm1518_vm1, %v1605_v28  ;;  %vm970_vm1 = vcmp.eq.s32.totalorder %v2052_v56, %v2196_v4  ;;  %vm1534_vm5 = vmpackc.low %vm971_vm12, %vm969_vm6  ;;  %v1165_v56 = vmul.f32 %v1687_v6, %v1687_v6  ;;  %v712_v59 = vadd.f32 %v711_v24, %v2387_v15 }
 0x17f   : > { %1521 = vmatprep.subr.msk.bf16.mxu1 %vm1520_vm2, %v1605_v28  ;;  %vm972_vm2 = vcmp.eq.s32.totalorder %v2055_v29, %v2196_v4  ;;  %v1170_v29 = vadd.f32 %v1164_v18, %v1162_v19  ;;  %v1577_v19 = vld [vmem:[%s1675_s7 + $0x38] sm:$0xff] }
 0x180   : > { %vm1532_vm11 = vmpackc.low %vm972_vm2, %vm970_vm1  ;;  %v713_v41 = vrot.slane %v712_v59, 2 }
 0x182   : > { %1523 = vmatpush1.bf16.msk.msra.mxu1 %vm1522_vm7, %v1605_v28  ;;  %vm974_vm7 = vcmp.eq.s32.totalorder %v2058_v54, %v2196_v4  ;;  %v1166_v54 = vmul.f32 %v1708_v14, %v1708_v14  ;;  %v714_v47 = vadd.f32 %v713_v41, %v712_v59 }
 0x183   : > { %1525 = vmatprep.subr.msk.bf16.mxu1 %vm1524_vm8, %v1605_v28  ;;  %vm976_vm8 = vcmp.eq.s32.totalorder %v2061_v57, %v2196_v4  ;;  %v1179_v57 = vadd.f32 %v1165_v56, %v1163_v40 }
 0x184   : > { %vm1536_vm3 = vmpackc.low %vm976_vm8, %vm974_vm7  ;;  %v1171_v32 = vadd.f32 %v1170_v29, %v1166_v54  ;;  %v715_v54 = vrot.slane %v714_v47, 1 }
 0x185   : > { %v1180_v9 = vadd.f32 %v1179_v57, %v1167_v26 }
 0x186   : > { %1527 = vmatpush1.bf16.msk.msra.mxu1 %vm1526_vm10, %v1605_v28  ;;  %vm1538_vm10 = vmpackc.low %vm975_vm9, %vm973_vm4  ;;  %v1172_v21 = vadd.f32 %v1171_v32, %v1168_v7 }
 0x187   : > { %1529 = vmatprep.subr.msk.bf16.mxu1 %vm1528_vm15, %v1605_v28  ;;  %v1181_v6 = vadd.f32 %v1180_v9, %v1169_v5  ;;  %vm1228_vm15 = vcmask 1040384  }
 0x188   : > { %v1173_v14 = vrot.slane %v1172_v21, 4 }
 0x189   : > { %v1182_v11 = vrot.slane %v1181_v6, 4 }
 0x18a   : > { %1531 = vmatpush1.bf16.msk.msra.mxu1 %vm1530_vm13, %v1605_v28  ;;  %v1174_v22 = vadd.f32 %v1173_v14, %v1172_v21  ;;  %v716_v21 = vadd.f32 %v715_v54, %v714_v47 }
 0x18b   : > { %1533 = vmatprep.subr.msk.bf16.mxu1 %vm1532_vm11, %v1605_v28  ;;  %v1183_v13 = vadd.f32 %v1182_v11, %v1181_v6 }
 0x18c   : > { %v1175_v61 = vrot.slane %v1174_v22, 2  ;;  %v1222_v46 = vmul.f32 2.0, %v716_v21 }
 0x18d   : > { %v1184_v23 = vrot.slane %v1183_v13, 2 }
 0x18e   : > { %1535 = vmatpush1.bf16.msk.msra.mxu1 %vm1534_vm5, %v1605_v28  ;;  %v1176_v42 = vadd.f32 %v1175_v61, %v1174_v22 }
 0x18f   : > { %1537 = vmatprep.subr.msk.bf16.mxu1 %vm1536_vm3, %v1605_v28 }
 0x190   : > { %v1177_v29 = vrot.slane %v1176_v42, 1 }
 0x192   : > { %1539 = vmatpush1.bf16.msk.msra.mxu1 %vm1538_vm10, %v1605_v28  ;;  %v1178_v6 = vadd.f32 %v1177_v29, %v1176_v42 }
 0x194   : > { %v1224_v38 = vmul.f32 128.0, %v1178_v6 }
 0x195   : > { %1110 = vmatmul.mubr.f32.vlgmr.msra.gmra.mrb[0].mxu1 %v1041_v50 }
 0x196   : > { %1115 = vmatprep.mubr.f32.mxu1 %v2386_v53  ;;  %v1226_v59 = vadd.f32 %v1224_v38, %v1222_v46 }
 0x199   : > { %1116 = vmatmul.mubr.f32.gmra.mrb[2].mxu1 %v1042_v62  ;;  %v1185_v62 = vadd.f32 %v1184_v23, %v1183_v13 }
 0x19a   : > { %1121 = vmatprep.mubr.f32.mxu1 %v2386_v53 }
 0x19b   : > { %v1186_v26 = vrot.slane %v1185_v62, 1 }
 0x19d   : > { %1122 = vmatmul.mubr.f32.gmra.mrb[4].mxu1 %v1043_v12  ;;  %v735_v12 = vadd.f32 %v734_v55, %v733_v49  ;;  %v1187_v15 = vadd.f32 %v1186_v26, %v1185_v62 }
 0x19e   : > { %1127 = vmatprep.mubr.f32.mxu1 %v2386_v53 }
 0x19f   : > { %v736_v7 = vrot.slane %v735_v12, 1 }
 0x1a1   : > { %1128 = vmatmul.mubr.f32.gmra.mrb[6].mxu1 %v1044_v17  ;;  %v737_v14 = vadd.f32 %v736_v7, %v735_v12 }
 0x268   : > { %v1111_v10 = vpop.f32.mrb[0].mxu1 }
 0x269   : > { %1134 = vst [vmem:[%s2330_s16] sm:$0xff] %v1111_v10  ;;  %v1113_v34 = vpop.f32.mrb[1].mxu1  ;;  %v1188_v0 = vsub.f32 %v1111_v10, %v1570_v30 }
 0x26a   : > { %1135 = vst [vmem:[%s2330_s16 + $0x8] sm:$0xff] %v1113_v34  ;;  %v1189_v60 = vsub.f32 %v1113_v34, %v1571_v48  ;;  %v1225_v48 = vmul.f32 128.0, %v1187_v15 }
 0x26b   : > { %v1196_v2 = vmul.f32 %v1188_v0, %v1188_v0  ;;  %v1223_v0 = vmul.f32 2.0, %v737_v14 }
 0x26c   : > { %v1117_v63 = vpop.f32.mrb[2].mxu1  ;;  %v1197_v36 = vmul.f32 %v1189_v60, %v1189_v60 }
 0x26d   : > { %1136 = vst [vmem:[%s2330_s16 + $0x10] sm:$0xff] %v1117_v63  ;;  %v1190_v37 = vsub.f32 %v1117_v63, %v1572_v25  ;;  %v1119_v3 = vpop.f32.mrb[3].mxu1 }
 0x26e   : > { %1137 = vst [vmem:[%s2330_s16 + $0x18] sm:$0xff] %v1119_v3  ;;  %v1191_v31 = vsub.f32 %v1119_v3, %v1573_v51 }
 0x26f   : > { %v1198_v1 = vmul.f32 %v1190_v37, %v1190_v37  ;;  %v1227_v37 = vadd.f32 %v1225_v48, %v1223_v0 }
 0x270   : > { %v1199_v27 = vmul.f32 %v1191_v31, %v1191_v31  ;;  %v1123_v16 = vpop.f32.mrb[4].mxu1 }
 0x271   : > { %v1204_v20 = vadd.f32 %v1198_v1, %v1196_v2  ;;  %1138 = vst [vmem:[%s2330_s16 + $0x20] sm:$0xff] %v1123_v16  ;;  %v1192_v39 = vsub.f32 %v1123_v16, %v1574_v8  ;;  %v1125_v52 = vpop.f32.mrb[5].mxu1 }
 0x272   : > { %v1213_v45 = vadd.f32 %v1199_v27, %v1197_v36  ;;  %1139 = vst [vmem:[%s2330_s16 + $0x28] sm:$0xff] %v1125_v52  ;;  %v1193_v44 = vsub.f32 %v1125_v52, %v1575_v35 }
 0x273   : > { %v1200_v4 = vmul.f32 %v1192_v39, %v1192_v39 }
 0x274   : > { %v1201_v28 = vmul.f32 %v1193_v44, %v1193_v44  ;;  %v1129_v58 = vpop.f32.mrb[6].mxu1 }
 0x275   : > { %v1205_v33 = vadd.f32 %v1204_v20, %v1200_v4  ;;  %1140 = vst [vmem:[%s2330_s16 + $0x30] sm:$0xff] %v1129_v58  ;;  %v1194_v50 = vsub.f32 %v1129_v58, %v1576_v43  ;;  %v1131_v53 = vpop.f32.mrb[7].mxu1 }
 0x276   : > { %v1214_v17 = vadd.f32 %v1213_v45, %v1201_v28  ;;  %1141 = vst [vmem:[%s2330_s16 + $0x38] sm:$0xff] %v1131_v53  ;;  %v1195_v18 = vsub.f32 %v1131_v53, %v1577_v19 }
 0x277   : > { %v1202_v40 = vmul.f32 %v1194_v50, %v1194_v50 }
 0x278   : > { %v1203_v56 = vmul.f32 %v1195_v18, %v1195_v18 }
 0x279   : > { %v1206_v57 = vadd.f32 %v1205_v33, %v1202_v40 }
 0x27a   : > { %v1215_v32 = vadd.f32 %v1214_v17, %v1203_v56 }
 0x27b   : > { %v1207_v5 = vrot.slane %v1206_v57, 4 }
 0x27c   : > { %v1216_v9 = vrot.slane %v1215_v32, 4 }
 0x27d   : > { %v1208_v10 = vadd.f32 %v1207_v5, %v1206_v57 }
 0x27e   : > { %v1217_v24 = vadd.f32 %v1216_v9, %v1215_v32 }
 0x27f   : > { %v1209_v34 = vrot.slane %v1208_v10, 2 }
 0x280   : > { %v1218_v11 = vrot.slane %v1217_v24, 2 }
 0x281   : > { %v1210_v30 = vadd.f32 %v1209_v34, %v1208_v10 }
 0x282   : > { %v1219_v60 = vadd.f32 %v1218_v11, %v1217_v24 }
 0x283   : > { %v1211_v63 = vrot.slane %v1210_v30, 1 }
 0x284   : > { %v1220_v22 = vrot.slane %v1219_v60, 1 }
 0x285   : > { %v1212_v25 = vadd.f32 %v1211_v63, %v1210_v30 }
 0x286   : > { %v1221_v3 = vadd.f32 %v1220_v22, %v1219_v60 }
 0x287   : > { %v1229_v13 = vsel %vm1228_vm15, %v1226_v59, %v1212_v25 }
 0x288   : > { %v1230_v49 = vsel %vm1228_vm15, %v1227_v37, %v1221_v3 }
 0x289   : > { %v1233_v51 = vcombine.low %v1229_v13, %v1230_v49 }
 0x28b   : > { %1495 = vst.sshfl [vmem:[%s331_s17] sm:$0x33 pattern:$0x76325410] %v1233_v51 }
 0x28c PF: > { %s17_s23 = sadd.s32 1, %s1600_s23   ;;  %s2389_s21 = smov %s1596_s22 }
 0x28d   : > { %p14_p6 = scmp.ge.s32.totalorder %s17_s23, 4   ;;  %s2390_s22 = smov %s2392_s24 }
 0x28f   :  { %16 = sbr.rel (!%p14_p6) target bundleno = 2 (0x2), region = 90 }

</bundles_post_ra>
